<compile_context>
chip_gen: v7x
topology: tpu7x:2x2x1
jax: 0.10.0
libtpu: 0.0.40
codegen_flags: <defaults>
</compile_context>

<pallas_src>
import math
import functools

import jax
import jax.numpy as jnp
from jax.experimental import pallas as pl
from jax.experimental.pallas import tpu as pltpu


def _round_up(x: int, m: int) -> int:
    return ((x + m - 1) // m) * m


def _simple_linear_kernel(x_ref, w1_ref, b1_ref, w2_ref, b2_ref, o_ref):
    # First Linear: bf16 operands into the MXU, f32 accumulation.
    x_bf16 = x_ref[...].astype(jnp.bfloat16)
    h = jnp.dot(x_bf16, w1_ref[...], preferred_element_type=jnp.float32)
    # Bias add + ReLU in f32 on the VPU (safe on v5e which has no bf16 VPU).
    h = jnp.maximum(h + b1_ref[...], 0.0)
    # Dropout(p=0.0) is the identity -- nothing to do.
    # Second Linear: downcast the activation to bf16 for the MXU, f32 accum.
    out = jnp.dot(h.astype(jnp.bfloat16), w2_ref[...],
                  preferred_element_type=jnp.float32)
    out = out + b2_ref[...]
    o_ref[...] = out.astype(o_ref.dtype)


@functools.partial(jax.jit, static_argnames=("tm",))
def simple_linear(x, w1, b1, w2, b2, *, tm=512):
    """Fused MLP forward. x: (..., in_dim) -> (..., out_dim).

    w1: (in_dim, hidden), w2: (hidden, out_dim)  (i.e. x @ W layout, equal to
    PyTorch's x @ W.T with W stored (out, in)).
    """
    in_dim = x.shape[-1]
    hidden_dim = w1.shape[1]
    out_dim = w2.shape[1]
    lead_shape = x.shape[:-1]
    m = int(math.prod(lead_shape)) if lead_shape else 1
    x2d = x.reshape(m, in_dim)

    # Lane-dense feature dims: pad hidden / out up to a multiple of 128.
    hid_p = _round_up(hidden_dim, 128)
    out_p = _round_up(out_dim, 128)

    # Weights -> bf16 (MXU-native; halves DMA + residency), zero-padded.
    w1p = jnp.pad(w1.astype(jnp.bfloat16), ((0, 0), (0, hid_p - hidden_dim)))
    w2p = jnp.pad(w2.astype(jnp.bfloat16),
                  ((0, hid_p - hidden_dim), (0, out_p - out_dim)))
    # Biases stay f32 (added to the f32 accumulator), padded + broadcast rows.
    b1p = jnp.pad(b1.astype(jnp.float32), (0, hid_p - hidden_dim)).reshape(1, hid_p)
    b2p = jnp.pad(b2.astype(jnp.float32), (0, out_p - out_dim)).reshape(1, out_p)

    # Row tile: big by default, clamped (to a multiple of 8) for small inputs.
    tm_eff = min(tm, _round_up(max(m, 8), 8))
    grid = (pl.cdiv(m, tm_eff),)

    # VMEM budget estimate (double-buffered inputs/outputs + intermediates).
    vmem_est = (
        2 * tm_eff * in_dim * x.dtype.itemsize          # x tiles
        + 2 * in_dim * hid_p * 2                        # W1 (bf16)
        + 2 * hid_p * 4                                 # b1
        + 2 * hid_p * out_p * 2                         # W2 (bf16)
        + 2 * out_p * 4                                 # b2
        + 2 * tm_eff * out_p * x.dtype.itemsize         # out tiles
        + tm_eff * hid_p * 4                            # h intermediate (f32)
        + tm_eff * out_p * 4                            # out intermediate (f32)
    )
    vmem_limit = int(min(max(2 * vmem_est, 32 * 1024 * 1024), 64 * 1024 * 1024))

    cost = pl.CostEstimate(
        flops=2 * m * (in_dim * hid_p + hid_p * out_p),
        transcendentals=0,
        bytes_accessed=(x2d.size * x2d.dtype.itemsize
                        + w1p.size * 2 + b1p.size * 4
                        + w2p.size * 2 + b2p.size * 4
                        + m * out_p * x.dtype.itemsize),
    )

    out2d = pl.pallas_call(
        _simple_linear_kernel,
        out_shape=jax.ShapeDtypeStruct((m, out_p), x.dtype),
        grid_spec=pltpu.PrefetchScalarGridSpec(
            num_scalar_prefetch=0,
            grid=grid,
            in_specs=[
                pl.BlockSpec((tm_eff, in_dim), lambda i: (i, 0)),   # x tile
                pl.BlockSpec((in_dim, hid_p), lambda i: (0, 0)),    # W1 (resident)
                pl.BlockSpec((1, hid_p), lambda i: (0, 0)),         # b1
                pl.BlockSpec((hid_p, out_p), lambda i: (0, 0)),     # W2 (resident)
                pl.BlockSpec((1, out_p), lambda i: (0, 0)),         # b2
            ],
            out_specs=pl.BlockSpec((tm_eff, out_p), lambda i: (i, 0)),
        ),
        compiler_params=pltpu.CompilerParams(
            dimension_semantics=("parallel",),
            vmem_limit_bytes=vmem_limit,
        ),
        cost_estimate=cost,
    )(x2d, w1p, b1p, w2p, b2p)

    # Slice away the lane padding; ragged rows were never written past m.
    return out2d[:, :out_dim].reshape(*lead_shape, out_dim)


def _xavier_uniform(key, fan_in, fan_out, dtype=jnp.float32):
    # Matches nn.init.xavier_uniform_ (gain=1): U(-a, a), a = sqrt(6/(fan_in+fan_out))
    a = math.sqrt(6.0 / (fan_in + fan_out))
    return jax.random.uniform(key, (fan_in, fan_out), dtype=dtype, minval=-a, maxval=a)


if __name__ == "__main__":
    # Module hyperparameters (hidden_dim defaults to out_dim when None; set explicitly here).
    in_dim, hidden_dim, out_dim = 32, 64, 32
    batch, seq = 2, 8  # MLP applied over the last dim; leading dims arbitrary.

    key = jax.random.PRNGKey(0)
    kx, kw1, kb1, kw2, kb2 = jax.random.split(key, 5)

    x = jax.random.normal(kx, (batch, seq, in_dim), dtype=jnp.float32)

    # Deterministic init (xavier-uniform weights, small uniform biases),
    # stored as (in_features, out_features) for x @ W.
    w1 = _xavier_uniform(kw1, in_dim, hidden_dim)
    b1 = jax.random.uniform(kb1, (hidden_dim,), minval=-0.1, maxval=0.1)
    w2 = _xavier_uniform(kw2, hidden_dim, out_dim)
    b2 = jax.random.uniform(kb2, (out_dim,), minval=-0.1, maxval=0.1)

    out = simple_linear(x, w1, b1, w2, b2)
    out = jax.block_until_ready(out)
    assert out.shape == (batch, seq, out_dim)

    # Reference 1: mimic the kernel's bf16-operand / f32-accumulate arithmetic.
    x2 = x.reshape(-1, in_dim)
    h_ref = jnp.maximum(
        jnp.dot(x2.astype(jnp.bfloat16), w1.astype(jnp.bfloat16),
                preferred_element_type=jnp.float32) + b1, 0.0)
    ref_bf16 = (jnp.dot(h_ref.astype(jnp.bfloat16), w2.astype(jnp.bfloat16),
                        preferred_element_type=jnp.float32) + b2
                ).reshape(batch, seq, out_dim)
    assert jnp.allclose(out, ref_bf16, atol=1e-3, rtol=1e-3)

    # Reference 2: pure f32 PyTorch-eval semantics (looser tol due to bf16 operands).
    ref_f32 = jnp.maximum(x @ w1 + b1, 0.0) @ w2 + b2
    assert jnp.allclose(out, ref_f32, atol=5e-2, rtol=5e-2)

    print("KERNEL_OK")
</pallas_src>

<mosaic_0001>
module attributes {stable_mosaic.version = 11 : i64} {
  func.func @_simple_linear_kernel(%arg0: i32, %arg1: memref<16x32xf32, #tpu.memory_space<vmem>>, %arg2: memref<32x128xbf16, #tpu.memory_space<vmem>>, %arg3: memref<1x128xf32, #tpu.memory_space<vmem>>, %arg4: memref<128x128xbf16, #tpu.memory_space<vmem>>, %arg5: memref<1x128xf32, #tpu.memory_space<vmem>>, %arg6: memref<16x128xf32, #tpu.memory_space<vmem>>) attributes {dimension_semantics = [#tpu.dimension_semantics<parallel>], iteration_bounds = array<i64: 1>, scalar_prefetch = 0 : i64, scratch_operands = 0 : i64, tpu.core_type = #tpu.core_type<tc>, window_params = [{transform_indices = @transform_0, window_bounds = array<i64: 16, 32>}, {pipeline_mode = #tpu.pipeline_mode<synchronous>, transform_indices = @transform_1, window_bounds = array<i64: 32, 128>}, {pipeline_mode = #tpu.pipeline_mode<synchronous>, transform_indices = @transform_2, window_bounds = array<i64: 1, 128>}, {pipeline_mode = #tpu.pipeline_mode<synchronous>, transform_indices = @transform_3, window_bounds = array<i64: 128, 128>}, {pipeline_mode = #tpu.pipeline_mode<synchronous>, transform_indices = @transform_4, window_bounds = array<i64: 1, 128>}, {transform_indices = @transform_5, window_bounds = array<i64: 16, 128>}]} {
    %c0 = arith.constant 0 : index
    %c0_0 = arith.constant 0 : index
    %0 = vector.load %arg1[%c0, %c0_0] : memref<16x32xf32, #tpu.memory_space<vmem>>, vector<16x32xf32>
    %1 = arith.truncf %0 : vector<16x32xf32> to vector<16x32xbf16>
    %c0_1 = arith.constant 0 : index
    %c0_2 = arith.constant 0 : index
    %2 = vector.load %arg2[%c0_1, %c0_2] : memref<32x128xbf16, #tpu.memory_space<vmem>>, vector<32x128xbf16>
    %cst = arith.constant dense<0.000000e+00> : vector<16x128xf32>
    %3 = tpu.matmul %1, %2, %cst {dimension_numbers = #tpu.dot_dimension_numbers<[1], [0], [0], [1], [0, 0, 1, 1], [], []>} : vector<16x32xbf16>, vector<32x128xbf16>, vector<16x128xf32> -> vector<16x128xf32>
    %c0_3 = arith.constant 0 : index
    %c0_4 = arith.constant 0 : index
    %4 = vector.load %arg3[%c0_3, %c0_4] : memref<1x128xf32, #tpu.memory_space<vmem>>, vector<1x128xf32>
    %5 = vector.broadcast %4 : vector<1x128xf32> to vector<16x128xf32>
    %6 = arith.addf %3, %5 : vector<16x128xf32>
    %cst_5 = arith.constant 0.000000e+00 : f32
    %7 = vector.broadcast %cst_5 : f32 to vector<16x128xf32>
    %8 = arith.maximumf %6, %7 : vector<16x128xf32>
    %9 = arith.truncf %8 : vector<16x128xf32> to vector<16x128xbf16>
    %c0_6 = arith.constant 0 : index
    %c0_7 = arith.constant 0 : index
    %10 = vector.load %arg4[%c0_6, %c0_7] : memref<128x128xbf16, #tpu.memory_space<vmem>>, vector<128x128xbf16>
    %cst_8 = arith.constant dense<0.000000e+00> : vector<16x128xf32>
    %11 = tpu.matmul %9, %10, %cst_8 {dimension_numbers = #tpu.dot_dimension_numbers<[1], [0], [0], [1], [0, 0, 1, 1], [], []>} : vector<16x128xbf16>, vector<128x128xbf16>, vector<16x128xf32> -> vector<16x128xf32>
    %c0_9 = arith.constant 0 : index
    %c0_10 = arith.constant 0 : index
    %12 = vector.load %arg5[%c0_9, %c0_10] : memref<1x128xf32, #tpu.memory_space<vmem>>, vector<1x128xf32>
    %13 = vector.broadcast %12 : vector<1x128xf32> to vector<16x128xf32>
    %14 = arith.addf %11, %13 : vector<16x128xf32>
    %c0_11 = arith.constant 0 : index
    %c0_12 = arith.constant 0 : index
    %15 = vector.load %arg6[%c0_11, %c0_12] : memref<16x128xf32, #tpu.memory_space<vmem>>, vector<16x128xf32>
    tpu.vector_store %arg6[%c0_11, %c0_12], %14 {strides = array<i32>} : memref<16x128xf32, #tpu.memory_space<vmem>>, vector<16x128xf32>,
    return
  }
  func.func @transform_0(%arg0: i32) -> (i32, i32) {
    %c0_i32 = arith.constant 0 : i32
    %c0_i32_0 = arith.constant 0 : i32
    return %arg0, %c0_i32 : i32, i32
  }
  func.func @transform_1(%arg0: i32) -> (i32, i32) {
    %c0_i32 = arith.constant 0 : i32
    %c0_i32_0 = arith.constant 0 : i32
    %c0_i32_1 = arith.constant 0 : i32
    return %c0_i32, %c0_i32_0 : i32, i32
  }
  func.func @transform_2(%arg0: i32) -> (i32, i32) {
    %c0_i32 = arith.constant 0 : i32
    %c0_i32_0 = arith.constant 0 : i32
    %c0_i32_1 = arith.constant 0 : i32
    return %c0_i32, %c0_i32_0 : i32, i32
  }
  func.func @transform_3(%arg0: i32) -> (i32, i32) {
    %c0_i32 = arith.constant 0 : i32
    %c0_i32_0 = arith.constant 0 : i32
    %c0_i32_1 = arith.constant 0 : i32
    return %c0_i32, %c0_i32_0 : i32, i32
  }
  func.func @transform_4(%arg0: i32) -> (i32, i32) {
    %c0_i32 = arith.constant 0 : i32
    %c0_i32_0 = arith.constant 0 : i32
    %c0_i32_1 = arith.constant 0 : i32
    return %c0_i32, %c0_i32_0 : i32, i32
  }
  func.func @transform_5(%arg0: i32) -> (i32, i32) {
    %c0_i32 = arith.constant 0 : i32
    %c0_i32_0 = arith.constant 0 : i32
    return %arg0, %c0_i32 : i32, i32
  }
}

</mosaic_0001>

<bundles_post_ra>
// kernel: simple_linear.1
= control target key start
LH: loop header
LB: loop body
LE: loop exit
PB: predicated region body
PF: predicated region fallthrough
CT: control target
= control target key end

     0   :  { %v278_v0 = vmov 0.0   ;;  %vm279_vm0 = vmmov 0   ;;  %vm47_vm1 = vcmask 261120   ;;  %s358_s1 = inlined_call_operand.vmem [shape: bf16[32,128], index: 1, kind: input, shape index: {}]   ;;  %s359_s0 = inlined_call_operand.vmem [shape: f32[16,32], index: 0, kind: input, shape index: {}]   ;;  %s360_s3 = inlined_call_operand.vmem [shape: bf16[128,128], index: 3, kind: input, shape index: {}]   ;;  %s361_s2 = inlined_call_operand.vmem [shape: f32[1,128], index: 2, kind: input, shape index: {}]   ;;  %s362_s4 = inlined_call_operand.vmem [shape: f32[1,128], index: 4, kind: input, shape index: {}]   ;;  %s363_s5 = inlined_call_operand.vmem [shape: f32[16,128], index: 5, kind: output, shape index: {}]  }
   0x1   :  { %238 = vmatprep.subr.bf16.mxu0 %v278_v0  ;;  %v268_v1 = vld [vmem:[%s358_s1] sm:$0xff]   ;;  %242 = vmatprep.mubr.msk.bf16.mxu0 %vm279_vm0, %v278_v0  ;;  %v269_v2 = vld [vmem:[%s358_s1 + $0x8] sm:$0xff]   ;;  %v272_v8 = vld [vmem:[%s360_s3 + $0x10] sm:$0xff]  }
   0x2   :  { %246 = vmatprep.subr.bf16.mxu1 %v278_v0  ;;  %262 = vmatprep.mubr.msk.bf16.mxu1 %vm279_vm0, %v278_v0  ;;  %v21_v3 = vld [vmem:[%s359_s0] sm:$0xff]  ;;  %v22_v4 = vld [vmem:[%s359_s0 + $0x8] sm:$0xff]  ;;  %v273_v9 = vld [vmem:[%s360_s3 + $0x18] sm:$0xff]  }
   0x3   :  { %239 = vmatpush3.bf16.msra.mxu0 %v268_v1  ;;  %v270_v5 = vld [vmem:[%s360_s3] sm:$0xff]   ;;  %v23_v6 = vpack.c.bf16 %v22_v4, %v21_v3  ;;  %v271_v7 = vld [vmem:[%s360_s3 + $0x8] sm:$0xff]   ;;  %v276_v12 = vld [vmem:[%s360_s3 + $0x30] sm:$0xff]  }
   0x4   :  { %240 = vmatprep.subr.bf16.mxu0 %v278_v0  ;;  %247 = vmatpush3.bf16.msra.mxu1 %v270_v5  ;;  %v274_v10 = vld [vmem:[%s360_s3 + $0x20] sm:$0xff]   ;;  %v275_v11 = vld [vmem:[%s360_s3 + $0x28] sm:$0xff]   ;;  %v277_v13 = vld [vmem:[%s360_s3 + $0x38] sm:$0xff]  }
   0x5   :  { %248 = vmatprep.subr.bf16.mxu1 %v278_v0  ;;  %v213_v14 = vld [vmem:[%s361_s2] ss:$0 sm:$0xff] }
   0x6   :  { %v217_v24 = vld [vmem:[%s362_s4] ss:$0 sm:$0xff] }
   0x7   :  { %241 = vmatpush3.bf16.msra.mxu0 %v269_v2 }
   0x8   :  { %249 = vmatpush3.bf16.msra.mxu1 %v271_v7 }
   0x9   :  { %250 = vmatprep.subr.bf16.mxu1 %v278_v0 }
   0xa   :  { %243 = vmatmul.mubr.msk.bf16.vlgmr.msra.gmra.mrb[0].mxu0 %vm47_vm1, %v23_v6 }
   0xc   :  { %251 = vmatpush3.bf16.msra.mxu1 %v272_v8 }
   0xd   :  { %252 = vmatprep.subr.bf16.mxu1 %v278_v0 }
  0x10   :  { %253 = vmatpush3.bf16.msra.mxu1 %v273_v9 }
  0x11   :  { %254 = vmatprep.subr.bf16.mxu1 %v278_v0 }
  0x14   :  { %255 = vmatpush3.bf16.msra.mxu1 %v274_v10 }
  0x15   :  { %256 = vmatprep.subr.bf16.mxu1 %v278_v0 }
  0x18   :  { %257 = vmatpush3.bf16.msra.mxu1 %v275_v11 }
  0x19   :  { %258 = vmatprep.subr.bf16.mxu1 %v278_v0 }
  0x1c   :  { %259 = vmatpush3.bf16.msra.mxu1 %v276_v12 }
  0x1d   :  { %260 = vmatprep.subr.bf16.mxu1 %v278_v0 }
  0x20   :  { %261 = vmatpush3.bf16.msra.mxu1 %v277_v13 }
  0xdd   :  { %v85_v15 = vpop.f32.mrb[0].mxu0 }
  0xde   :  { %v86_v16 = vadd.f32 %v213_v14, %v85_v15  ;;  %v244_v17 = vpop.f32.mrb[1].mxu0 }
  0xdf   :  { %v88_v18 = vpop.f32.mrb[2].mxu0 }
  0xe0   :  { %v89_v19 = vadd.f32 %v213_v14, %v88_v18  ;;  %v245_v20 = vpop.f32.mrb[3].mxu0  ;;  %v92_v21 = vmax.f32 %v86_v16, 0.0 }
  0xe2   :  { %v93_v22 = vmax.f32 %v89_v19, 0.0 }
  0xe4   :  { %v94_v23 = vpack.c.bf16 %v93_v22, %v92_v21 }
  0xe6   :  { %263 = vmatmul.mubr.bf16.vlgmr.msra.gmra.mrb[0].mxu1 %v94_v23 }
 0x1b9   :  { %v200_v25 = vpop.f32.mrb[0].mxu1 }
 0x1ba   :  { %v201_v26 = vadd.f32 %v217_v24, %v200_v25  ;;  %v264_v27 = vpop.f32.mrb[1].mxu1 }
 0x1bb   :  { %v203_v28 = vpop.f32.mrb[2].mxu1 }
 0x1bc   :  { %207 = vst [vmem:[%s363_s5] sm:$0xff] %v201_v26  ;;  %v204_v29 = vadd.f32 %v217_v24, %v203_v28  ;;  %v265_v30 = vpop.f32.mrb[3].mxu1 }
 0x1be   :  { %208 = vst [vmem:[%s363_s5 + $0x8] sm:$0xff] %v204_v29 }

</bundles_post_ra>
